<compile_context>
chip_gen: v5e
topology: v5e:2x2
jax: 0.10.0
libtpu: 0.0.40
codegen_flags: <defaults>
</compile_context>

<pallas_src>
import functools

import jax
import jax.numpy as jnp
import numpy as np
from jax.experimental import pallas as pl
from jax.experimental.pallas import tpu as pltpu


# ----------------------------------------------------------------------------
# Host-side interpolation matrices (numpy + lru_cache; nothing re-traced).
# ----------------------------------------------------------------------------
def _cubic_weights(t, a=-0.75):
    """PyTorch bicubic convolution kernel (a = -0.75)."""
    t = np.abs(t)
    w1 = (a + 2.0) * t ** 3 - (a + 3.0) * t ** 2 + 1.0
    w2 = a * t ** 3 - 5.0 * a * t ** 2 + 8.0 * a * t - 4.0 * a
    return np.where(t <= 1.0, w1, np.where(t < 2.0, w2, 0.0))


@functools.lru_cache(maxsize=None)
def _bicubic_matrix(in_size, out_size):
    """(out, in) matrix M with M @ v == PyTorch bicubic resize of v
    (align_corners=False, borders handled by index clamping)."""
    o = np.arange(out_size, dtype=np.float64)
    x = (o + 0.5) * (float(in_size) / float(out_size)) - 0.5
    x0 = np.floor(x)
    taps = x0[:, None] + np.arange(-1, 3, dtype=np.float64)[None, :]   # (out, 4)
    wts = _cubic_weights(x[:, None] - taps)                            # (out, 4)
    idx = np.clip(taps.astype(np.int64), 0, in_size - 1)
    m = np.zeros((out_size, in_size), np.float64)
    np.add.at(m, (np.repeat(np.arange(out_size), 4), idx.reshape(-1)),
              wts.reshape(-1))
    return m


@functools.lru_cache(maxsize=None)
def _upsample_pad_matrix(in_size):
    """x2 bicubic resize matrix with the trailing ReflectionPad(1) row folded
    in: padded row 2*in_size is a copy of row 2*in_size - 2.  float64."""
    out = 2 * in_size
    m = _bicubic_matrix(in_size, out)
    return np.concatenate([m, m[out - 2:out - 1]], axis=0)     # (2*in+1, in)


@functools.lru_cache(maxsize=None)
def _fused_kron_matrix_t(h, w):
    """(h*w, (2h+1)*(2w+1)) float32 matrix M so that, per channel,
    flatten(x) @ M == flatten(upsample_pad(x))  (row-major flattening)."""
    k = np.kron(_upsample_pad_matrix(h), _upsample_pad_matrix(w))  # (HpWp, hw)
    return np.ascontiguousarray(k.T).astype(np.float32)


# ----------------------------------------------------------------------------
# Kernels
# ----------------------------------------------------------------------------
def _fused_upsample_kernel(x_ref, mt_ref, *rest):
    """Lane-dense path: (cb, h*w) block @ (h*w, Hp*Wp) -> (cb, Hp*Wp).

    `rest` is (out_ref,) for the plain path, or (concat_buf_ref, out_ref) when
    the kernel writes directly into the aliased concat output (the aliased HBM
    ref is never touched here; aliasing is handled at the pallas_call level).
    """
    out_ref = rest[-1]
    m = mt_ref[...]
    x = x_ref[...].astype(m.dtype)
    out_ref[...] = jnp.dot(
        x, m, preferred_element_type=jnp.float32).astype(out_ref.dtype)


def _separable_upsample_kernel(x_ref, bh_ref, bwt_ref, out_ref):
    """Separable path (large spatial): (cb, h, w) -> (cb, Hp, Wp)."""
    cb, h, w = x_ref.shape
    bwt = bwt_ref[...]                                 # (w, Wp)
    bh = bh_ref[...]                                   # (Hp, h)
    x = x_ref[...].astype(bwt.dtype)

    # W-resize (+ folded right reflection pad): one flat MXU matmul amortized
    # over the whole channel block (the old h % 8 fallback branch is removed;
    # if h % 8 != 0 the reshape is a one-time sublane relayout).
    t = jnp.dot(x.reshape(cb * h, w), bwt,
                preferred_element_type=jnp.float32)    # (cb*h, Wp)
    t = t.astype(bh.dtype)

    # H-resize (+ folded bottom reflection pad): bh stays a single shared 2-D
    # MXU operand -- no cb-fold broadcast_to materialization.  In this regime
    # (large spatial; small spatial goes through the fused path) each per-
    # channel (Hp, h) @ (h, Wp) matmul is large, so the MXU stays busy.  cb is
    # capped (<= 16) so this static unroll stays small.
    for c in range(cb):
        out_ref[c] = jnp.dot(
            bh, t[c * h:(c + 1) * h, :],
            preferred_element_type=jnp.float32).astype(out_ref.dtype)


# ----------------------------------------------------------------------------
# Planning helpers (all trace-time Python ints).
# ----------------------------------------------------------------------------
def _cdiv(a, b):
    return -(-a // b)


def _round_down_mult8(x):
    return (x // 8) * 8


def _aligned_divisor(c, cap):
    """Largest multiple of 8 that divides c and is <= cap (0 if none)."""
    best = 0
    for d in range(8, min(c, cap) + 1, 8):
        if c % d == 0:
            best = d
    return best


def _tpu_vmem_limits():
    """Per-generation scoped-VMEM request + working-set budget.
    v5e/v6e (128 MiB physical) -> limit 64 MiB, budget 32 MiB;
    v7x (64 MiB per TensorCore) -> limit 32 MiB, budget 16 MiB."""
    phys = 64 << 20            # conservative default (v7x per-TC)
    try:
        phys = int(pltpu.get_tpu_info().vmem_capacity_bytes)
    except Exception:
        pass
    limit = int(min(phys // 2, 96 << 20))
    budget = limit // 2        # headroom for compiler temporaries / relayouts
    return limit, budget


def _plan_fused(n, c1, c2, hw_in, hw_out, in_item, out_item, mat_item, budget):
    """Channel block size for the fused path + direct-concat-write decision."""
    kron_bytes = hw_in * hw_out * mat_item
    # double-buffered input + double-buffered output + f32 matmul result
    per_c = 2 * hw_in * in_item + 2 * hw_out * out_item + hw_out * 4
    avail = max(budget - 2 * kron_bytes, per_c)
    cb = int(min(max(avail // per_c, 1), c2))
    if cb < c2:
        cb = max(8, _round_down_mult8(cb))     # (8,128) sublane constraint
    # Keep >= 4 grid steps so both TensorCores of a v7x chip get work; the
    # extra per-step overhead (~0.35us) is negligible on v5e/v6e.
    while n * _cdiv(c2, cb) < 4 and cb >= 16:
        cb = max(8, _round_down_mult8(cb // 2))
    # Direct write into the concatenated output needs the upsampled channel
    # blocks to start at an exact block boundary (c1 % cb == 0, cb % 8 == 0).
    direct = cb % 8 == 0 and c1 % cb == 0 and c1 > 0
    if not direct and c1 > 0 and c1 % 8 == 0:
        d = _aligned_divisor(c1, cb)
        if d >= max(8, cb // 2):               # don't shrink blocks > 2x for it
            cb, direct = d, True
    return cb, direct


def _plan_separable(n, c2, h, w, hp, wp, in_item, out_item, budget,
                    max_unroll=16):
    per_c = (2 * h * w * in_item + 2 * hp * wp * out_item
             + h * wp * 4 + hp * wp * 4)
    resident = 2 * (hp * h + w * wp) * 4
    avail = max(budget - resident, per_c)
    cb = int(min(max(avail // per_c, 1), c2, max_unroll))
    while n * _cdiv(c2, cb) < 4 and cb > 1:
        cb = max(1, cb // 2)
    return cb


# ----------------------------------------------------------------------------
# Public wrapper: ConcatLayer.forward
# ----------------------------------------------------------------------------
def concat_layer(input_layer, up_input_layer, *, compute_dtype=None,
                 force_separable=False):
    """Bicubic x2 upsample of up_input_layer (PyTorch semantics) +
    ReflectionPad2d((0,1,0,1)), channel-concatenated after input_layer.

    compute_dtype: optional (e.g. jnp.bfloat16) dtype for the MXU operands;
    default keeps float32 parity with the PyTorch bicubic.
    """
    n, c1, hp, wp = input_layer.shape
    n2, c2, h, w = up_input_layer.shape
    assert n == n2
    assert hp == 2 * h + 1 and wp == 2 * w + 1, (
        "ConcatLayer expects input_layer spatial = (2h+1, 2w+1)")

    out_dtype = jnp.result_type(input_layer.dtype, up_input_layer.dtype)
    if c2 == 0:
        return input_layer.astype(out_dtype)

    vmem_limit, budget = _tpu_vmem_limits()
    mat_dtype = jnp.dtype(compute_dtype) if compute_dtype is not None else \
        jnp.dtype(jnp.float32)
    in_item = up_input_layer.dtype.itemsize
    out_item = jnp.dtype(out_dtype).itemsize

    hw_in, hw_out = h * w, hp * wp
    kron_bytes = hw_in * hw_out * mat_dtype.itemsize
    use_fused = (not force_separable) and kron_bytes <= budget // 4

    cparams = pltpu.CompilerParams(
        dimension_semantics=("parallel", "parallel"),
        vmem_limit_bytes=vmem_limit)

    if use_fused:
        # ------------------------- fused, lane-dense path -------------------
        up_flat = up_input_layer.reshape(n, c2, hw_in)      # contiguous: free
        mt = jnp.asarray(_fused_kron_matrix_t(h, w)).astype(mat_dtype)
        cb, direct = _plan_fused(n, c1, c2, hw_in, hw_out, in_item, out_item,
                                 mat_dtype.itemsize, budget)
        grid = (n, _cdiv(c2, cb))
        in_specs = [
            pl.BlockSpec((None, cb, hw_in), lambda b, c: (b, c, 0)),
            pl.BlockSpec((hw_in, hw_out), lambda b, c: (0, 0)),   # resident
        ]

        if direct:
            # Write the upsampled channels straight into the concatenated
            # output (aliased, channel-padded copy of input_layer) and skip
            # the jnp.concatenate HBM round-trip.
            c1_blocks = c1 // cb
            placed = jnp.pad(
                input_layer.astype(out_dtype).reshape(n, c1, hw_out),
                ((0, 0), (0, c2), (0, 0)))
            out_flat = pl.pallas_call(
                _fused_upsample_kernel,
                out_shape=jax.ShapeDtypeStruct((n, c1 + c2, hw_out), out_dtype),
                grid_spec=pltpu.PrefetchScalarGridSpec(
                    num_scalar_prefetch=0, grid=grid,
                    in_specs=in_specs + [pl.BlockSpec(memory_space=pl.ANY)],
                    out_specs=pl.BlockSpec(
                        (None, cb, hw_out),
                        lambda b, c: (b, c1_blocks + c, 0)),
                ),
                input_output_aliases={2: 0},
                compiler_params=cparams,
            )(up_flat, mt, placed)
            return out_flat.reshape(n, c1 + c2, hp, wp)

        up_out = pl.pallas_call(
            _fused_upsample_kernel,
            out_shape=jax.ShapeDtypeStruct((n, c2, hw_out), out_dtype),
            grid_spec=pltpu.PrefetchScalarGridSpec(
                num_scalar_prefetch=0, grid=grid,
                in_specs=in_specs,
                out_specs=pl.BlockSpec((None, cb, hw_out),
                                       lambda b, c: (b, c, 0)),
            ),
            compiler_params=cparams,
        )(up_flat, mt).reshape(n, c2, hp, wp)
    else:
        # ------------------------- separable fallback path ------------------
        bh = jnp.asarray(
            _upsample_pad_matrix(h).astype(np.float32)).astype(mat_dtype)
        bwt = jnp.asarray(
            _upsample_pad_matrix(w).T.astype(np.float32)).astype(mat_dtype)
        cb = _plan_separable(n, c2, h, w, hp, wp, in_item, out_item, budget)
        up_out = pl.pallas_call(
            _separable_upsample_kernel,
            out_shape=jax.ShapeDtypeStruct((n, c2, hp, wp), out_dtype),
            grid_spec=pltpu.PrefetchScalarGridSpec(
                num_scalar_prefetch=0, grid=(n, _cdiv(c2, cb)),
                in_specs=[
                    pl.BlockSpec((None, cb, h, w), lambda b, c: (b, c, 0, 0)),
                    pl.BlockSpec((hp, h), lambda b, c: (0, 0)),   # resident
                    pl.BlockSpec((w, wp), lambda b, c: (0, 0)),   # resident
                ],
                out_specs=pl.BlockSpec((None, cb, hp, wp),
                                       lambda b, c: (b, c, 0, 0)),
            ),
            compiler_params=cparams,
        )(up_input_layer, bh, bwt)

    return jnp.concatenate([input_layer.astype(out_dtype), up_out], axis=1)


# ----------------------------------------------------------------------------
# Self-test
# ----------------------------------------------------------------------------
if __name__ == "__main__":
    def reference(inp, up):
        h, w = up.shape[2], up.shape[3]
        bh = jnp.asarray(_upsample_pad_matrix(h).astype(np.float32))
        bw = jnp.asarray(_upsample_pad_matrix(w).astype(np.float32))
        up_ref = jnp.einsum("oi,ncij,pj->ncop", bh, up, bw)
        return jnp.concatenate([inp, up_ref], axis=1)

    configs = [
        # (N, C1, C2, h, w, force_separable)
        (2, 16, 16, 8, 8, False),   # fused path + direct write into concat out
        (2, 5, 3, 8, 8, False),     # fused path, ragged channels -> XLA concat
        (1, 4, 6, 12, 10, True),    # separable fallback kernel (forced)
    ]

    key = jax.random.PRNGKey(0)
    # HIGHEST matmul precision on both sides so the f32 comparison is tight;
    # production callers may use the default (or compute_dtype=bf16) instead.
    with jax.default_matmul_precision("highest"):
        for (N, C1, C2, h, w, force_sep) in configs:
            key, k1, k2 = jax.random.split(key, 3)
            Hp, Wp = 2 * h + 1, 2 * w + 1
            inp = jax.random.normal(k1, (N, C1, Hp, Wp), dtype=jnp.float32)
            up = jax.random.normal(k2, (N, C2, h, w), dtype=jnp.float32)

            fn = jax.jit(functools.partial(concat_layer,
                                           force_separable=force_sep))
            out = jax.block_until_ready(fn(inp, up))
            ref = reference(inp, up)

            assert out.shape == (N, C1 + C2, Hp, Wp), out.shape
            max_err = float(jnp.max(jnp.abs(out - ref)))
            assert max_err < 1e-3, (N, C1, C2, h, w, force_sep, max_err)

    print("KERNEL_OK")
</pallas_src>

<mosaic_0001>
module attributes {stable_mosaic.version = 11 : i64} {
  func.func @_fused_upsample_kernel(%arg0: i32, %arg1: i32, %arg2: memref<1x8x64xf32, #tpu.memory_space<vmem>>, %arg3: memref<64x289xf32, #tpu.memory_space<vmem>>, %arg4: memref<2x32x289xf32, #tpu.memory_space<any>>, %arg5: memref<1x8x289xf32, #tpu.memory_space<vmem>>) attributes {dimension_semantics = [#tpu.dimension_semantics<parallel>, #tpu.dimension_semantics<parallel>], iteration_bounds = array<i64: 2, 2>, scalar_prefetch = 0 : i64, scratch_operands = 0 : i64, tpu.core_type = #tpu.core_type<tc>, window_params = [{transform_indices = @transform_0, window_bounds = array<i64: 1, 8, 64>}, {pipeline_mode = #tpu.pipeline_mode<synchronous>, transform_indices = @transform_1, window_bounds = array<i64: 64, 289>}, {}, {transform_indices = @transform_3, window_bounds = array<i64: 1, 8, 289>}]} {
    %c0 = arith.constant 0 : index
    %c0_0 = arith.constant 0 : index
    %0 = vector.load %arg3[%c0, %c0_0] : memref<64x289xf32, #tpu.memory_space<vmem>>, vector<64x289xf32>
    %c0_1 = arith.constant 0 : index
    %c0_2 = arith.constant 0 : index
    %c0_3 = arith.constant 0 : index
    %1 = vector.load %arg2[%c0_1, %c0_2, %c0_3] : memref<1x8x64xf32, #tpu.memory_space<vmem>>, vector<1x8x64xf32>
    %2 = vector.shape_cast %1 : vector<1x8x64xf32> to vector<8x64xf32>
    %cst = arith.constant dense<0.000000e+00> : vector<8x289xf32>
    %3 = tpu.matmul %2, %0, %cst {dimension_numbers = #tpu.dot_dimension_numbers<[1], [0], [0], [1], [0, 0, 1, 1], [], []>, precision = #tpu.contract_precision<fp32>} : vector<8x64xf32>, vector<64x289xf32>, vector<8x289xf32> -> vector<8x289xf32>
    %c0_4 = arith.constant 0 : index
    %c0_5 = arith.constant 0 : index
    %c0_6 = arith.constant 0 : index
    %4 = vector.load %arg5[%c0_4, %c0_5, %c0_6] : memref<1x8x289xf32, #tpu.memory_space<vmem>>, vector<1x8x289xf32>
    %5 = vector.shape_cast %4 : vector<1x8x289xf32> to vector<8x289xf32>
    %6 = vector.shape_cast %3 : vector<8x289xf32> to vector<1x8x289xf32>
    tpu.vector_store %arg5[%c0_4, %c0_5, %c0_6], %6 {strides = array<i32>} : memref<1x8x289xf32, #tpu.memory_space<vmem>>, vector<1x8x289xf32>,
    return
  }
  func.func @transform_0(%arg0: i32, %arg1: i32) -> (i32, i32, i32) {
    %c0_i32 = arith.constant 0 : i32
    %c0_i32_0 = arith.constant 0 : i32
    return %arg0, %arg1, %c0_i32 : i32, i32, i32
  }
  func.func @transform_1(%arg0: i32, %arg1: i32) -> (i32, i32) {
    %c0_i32 = arith.constant 0 : i32
    %c0_i32_0 = arith.constant 0 : i32
    %c0_i32_1 = arith.constant 0 : i32
    return %c0_i32, %c0_i32_0 : i32, i32
  }
  func.func @transform_3(%arg0: i32, %arg1: i32) -> (i32, i32, i32) {
    %c2_i32 = arith.constant 2 : i32
    %0 = arith.addi %c2_i32, %arg1 : i32
    %c0_i32 = arith.constant 0 : i32
    %c0_i32_0 = arith.constant 0 : i32
    return %arg0, %0, %c0_i32 : i32, i32, i32
  }
}

</mosaic_0001>

<bundles_post_ra>
// kernel: concat_layer.1
= control target key start
LH: loop header
LB: loop body
LE: loop exit
PB: predicated region body
PF: predicated region fallthrough
CT: control target
= control target key end

     0   :  { %s1135_s12 = smov 0   ;;  %s1137_s13 = smov 0   ;;  %s1649_s0 = inlined_call_operand.vmem [shape: f32[2,16,64], index: 0, kind: input, shape index: {}]   ;;  %s1650_s1 = inlined_call_operand.vmem [shape: f32[64,289], index: 1, kind: input, shape index: {}]   ;;  %s1651_s2 = inlined_call_operand.vmem [shape: f32[2,32,289], index: 2, kind: input, shape index: {}, may-alias: {2,3}]   ;;  %s1652_s3 = inlined_call_operand.vmem [shape: f32[2,32,289], index: 3, kind: output, shape index: {}, may-alias: {2,3}]  }
   0x1   :  { %s1139_s14 = smov 0   ;;  %s1141_s15 = smov 0  }
   0x2   :  { %s1143_s16 = smov 0  }
   0x3 LB: > { %s22_s2 = sadd.s32 1, %s1105_s14  ;;  %s25_s17 = sadd.s32 1, %s1109_s15  ;;  %s1113_s16 = sphi %s1143_s16, %s13_s16   ;;  %s1109_s15 = sphi %s1141_s15, %s1656_s15   ;;  %s1105_s14 = sphi %s1139_s14, %s1655_s14   ;;  %s1101_s13 = sphi %s1137_s13, %s1654_s13   ;;  %s1097_s12 = sphi %s1135_s12, %s1653_s12  }
   0x4   : > { %p23_p0 = scmp.ge.s32.totalorder %s22_s2, 2  ;;  %p1027_p1 = scmp.ge.s32.totalorder %s1113_s16, 1 }
   0x5   : > { %p134_p2 = scmp.lt.s32.totalorder %s1113_s16, 5 }
   0x6   : > { %s1658_s2 = smov (%p23_p0, %s22_s2), 0  ;;  %s1660_s17 = smov (!%p23_p0, %s25_s17), %s1109_s15 }
   0x7   : > { %p135_p3 = pnand %p1027_p1, %p134_p2  ;;  %p27_p4 = scmp.ge.s32.totalorder %s1660_s17, 2 }
   0x8   : > { %p164_p5 = scmp.lt.s32.totalorder (!%p135_p3), %s1101_s13, 1  ;;  %p166_p6 = scmp.lt.s32.totalorder (!%p135_p3), %s1097_s12, 1 }
   0x9   : > { %s1662_s17 = smov (%p27_p4, %s1660_s17), 0  ;;  %138 = sbr.rel (%p135_p3) target bundleno = 235 (0xeb), region = 28 }
   0xa   : > { %s172_s4 = sadd.s32 (!%p135_p3), 2, %s1097_s12 }
   0xb   : > { %p175_p7 = scmp.lt.s32.totalorder (!%p135_p3), %s172_s4, 3 }
   0xe   : > { %v204_v0 = vld [vmem:[%s1650_s1 + $0xa8] sm:$0xff]  ;;  %v201_v1 = vld [vmem:[%s1650_s1 + $0x90] sm:$0xff]  ;;  %v198_v2 = vld [vmem:[%s1650_s1 + $0x78] sm:$0xff]  ;;  %s1664_s13 = smov (!%p164_p5, %s1101_s13), 1  ;;  %vm208_vm0 = vcmask 523264   ;;  %s1666_s4 = smov (!%p175_p7, %s172_s4), 3 }
   0xf   : > { %v1180_v3 = vand.u32 4294901760, %v204_v0  ;;  %v1182_v4 = vand.u32 4294901760, %v201_v1  ;;  %v1184_v5 = vand.u32 4294901760, %v198_v2  ;;  %v195_v6 = vld [vmem:[%s1650_s1 + $0x60] sm:$0xff]  ;;  %v192_v7 = vld [vmem:[%s1650_s1 + $0x48] sm:$0xff]  ;;  %v189_v8 = vld [vmem:[%s1650_s1 + $0x30] sm:$0xff] }
  0x10   : > { %v1195_v9 = vand.u32 4294901760, %v195_v6  ;;  %v1197_v10 = vand.u32 4294901760, %v192_v7  ;;  %v1199_v11 = vand.u32 4294901760, %v189_v8  ;;  %v186_v12 = vld [vmem:[%s1650_s1 + $0x18] sm:$0xff]  ;;  %v183_v13 = vld [vmem:[%s1650_s1] sm:$0xff]  ;;  %s167_s7 = scalar_select %p166_p6, %s1097_s12, 1 }
  0x11   : > { %221 = vmatpush.msra.mxu0 %v1180_v3  ;;  %v1209_v14 = vsub.f32 %v204_v0, %v1180_v3  ;;  %v1212_v15 = vsub.f32 %v201_v1, %v1182_v4  ;;  %353 = vmatpush.msra.mxu3 %v1180_v3  ;;  %v1216_v16 = vsub.f32 %v198_v2, %v1184_v5  ;;  %v1218_v17 = vand.u32 4294901760, %v186_v12  ;;  %s1028_s8 = sshll.u32 %s1664_s13, 1  ;;  %v205_v34 = vld [vmem:[%s1650_s1 + $0xb0] sm:$0xff]  ;;  %v202_v35 = vld [vmem:[%s1650_s1 + $0x98] sm:$0xff]  ;;  %v199_v36 = vld [vmem:[%s1650_s1 + $0x80] sm:$0xff]  ;;  %s1034_s5 = smul.u32 12, %s1664_s13 }
  0x12   : > { %v1226_v18 = vsub.f32 %v195_v6, %v1195_v9  ;;  %v1229_v19 = vsub.f32 %v192_v7, %v1197_v10  ;;  %v1231_v20 = vand.u32 4294901760, %v183_v13  ;;  %v1234_v21 = vsub.f32 %v189_v8, %v1199_v11  ;;  %s169_s9 = sadd.s32 %s1028_s8, %s167_s7  ;;  %v196_v39 = vld [vmem:[%s1650_s1 + $0x68] sm:$0xff]  ;;  %v193_v48 = vld [vmem:[%s1650_s1 + $0x50] sm:$0xff]  ;;  %v190_v61 = vld [vmem:[%s1650_s1 + $0x38] sm:$0xff]  ;;  %s1033_s6 = smul.u32 3, %s1666_s4 }
  0x13   : > { %223 = vmatpush.msra.mxu0 %v1182_v4  ;;  %v255_v22 = vand.u32 4294901760, %v1209_v14  ;;  %316 = vmatpush.msra.mxu2 %v1209_v14  ;;  %v261_v23 = vand.u32 4294901760, %v1212_v15  ;;  %v267_v24 = vand.u32 4294901760, %v1216_v16  ;;  %v1250_v28 = vsub.f32 %v186_v12, %v1218_v17  ;;  %s1029_s10 = sshll.u32 %s169_s9, 3  ;;  %v187_v7 = vld [vmem:[%s1650_s1 + $0x20] sm:$0xff] }
  0x14   : > { %355 = vmatpush.msra.mxu3 %v1182_v4  ;;  %v273_v25 = vand.u32 4294901760, %v1226_v18  ;;  %v279_v26 = vand.u32 4294901760, %v1229_v19  ;;  %v285_v27 = vand.u32 4294901760, %v1234_v21  ;;  %v1268_v33 = vsub.f32 %v183_v13, %v1231_v20  ;;  %s171_s25 = scalar_lea.vmem %s1649_s0, %s1029_s10  ;;  %s179_s7 = sadd.s32 %s1034_s5, %s1033_s6 }
  0x15   : > { %225 = vmatpush.msra.mxu0 %v1184_v5  ;;  %v256_v29 = vsub.f32 %v1209_v14, %v255_v22  ;;  %v262_v30 = vsub.f32 %v1212_v15, %v261_v23  ;;  %319 = vmatpush.msra.mxu2 %v1212_v15  ;;  %v268_v31 = vsub.f32 %v1216_v16, %v267_v24  ;;  %v207_v40 = vld [vmem:[%s171_s25] sm:$0xff]  ;;  %v291_v43 = vand.u32 4294901760, %v1250_v28  ;;  %s1030_s8 = sshll.u32 %s179_s7, 3 }
  0x16   : > { %v274_v32 = vsub.f32 %v1226_v18, %v273_v25  ;;  %357 = vmatpush.msra.mxu3 %v1184_v5  ;;  %v280_v41 = vsub.f32 %v1229_v19, %v279_v26  ;;  %v286_v42 = vsub.f32 %v1234_v21, %v285_v27  ;;  %v1296_v45 = vand.u32 4294901760, %v205_v34  ;;  %s181_s11 = scalar_lea.vmem %s1652_s3, %s1030_s8 }
  0x17   : > { %v257_v37 = vand.u32 4294901760, %v256_v29  ;;  %227 = vmatpush.msra.mxu0 %v1195_v9  ;;  %v263_v38 = vand.u32 4294901760, %v262_v30  ;;  %322 = vmatpush.msra.mxu2 %v1216_v16  ;;  %v269_v44 = vand.u32 4294901760, %v268_v31  ;;  %v1298_v46 = vand.u32 4294901760, %v202_v35 }
  0x18   : > { %359 = vmatpush.msra.mxu3 %v1195_v9  ;;  %v1300_v47 = vand.u32 4294901760, %v199_v36  ;;  %v275_v49 = vand.u32 4294901760, %v274_v32  ;;  %v297_v50 = vand.u32 4294901760, %v1268_v33  ;;  %v1308_v51 = vand.u32 4294901760, %v196_v39  ;;  %v184_v32 = vld [vmem:[%s1650_s1 + $0x8] sm:$0xff] }
  0x19   : > { %258 = vmatpush.msra.mxu1 %v257_v37  ;;  %229 = vmatpush.msra.mxu0 %v1197_v10  ;;  %v210_v52 = vsel %vm208_vm0, %v207_v40, 0  ;;  %v1313_v53 = vsub.f32 %v205_v34, %v1296_v45  ;;  %v1316_v54 = vsub.f32 %v202_v35, %v1298_v46  ;;  %v281_v57 = vand.u32 4294901760, %v280_v41 }
  0x1a   : > { %325 = vmatpush.msra.mxu2 %v1226_v18  ;;  %361 = vmatpush.msra.mxu3 %v1197_v10  ;;  %v1319_v55 = vsub.f32 %v199_v36, %v1300_v47  ;;  %v1321_v56 = vand.u32 4294901760, %v210_v52  ;;  %v292_v58 = vsub.f32 %v1250_v28, %v291_v43  ;;  %v1328_v59 = vand.u32 4294901760, %v193_v48 }
  0x1b   : > { %264 = vmatpush.msra.mxu1 %v263_v38  ;;  %231 = vmatpush.msra.mxu0 %v1199_v11  ;;  %v1331_v60 = vsub.f32 %v196_v39, %v1308_v51  ;;  %v492_v62 = vand.u32 4294901760, %v1313_v53  ;;  %v498_v63 = vand.u32 4294901760, %v1316_v54  ;;  %v287_v2 = vand.u32 4294901760, %v286_v42 }
  0x1c   : > { %328 = vmatpush.msra.mxu2 %v1229_v19  ;;  %363 = vmatpush.msra.mxu3 %v1199_v11  ;;  %v504_v0 = vand.u32 4294901760, %v1319_v55  ;;  %v1341_v1 = vsub.f32 %v210_v52, %v1321_v56  ;;  %v298_v6 = vsub.f32 %v1268_v33, %v297_v50  ;;  %v1359_v29 = vand.u32 4294901760, %v190_v61 }
  0x1d   : > { %270 = vmatpush.msra.mxu1 %v269_v44  ;;  %233 = vmatpush.msra.mxu0 %v1218_v17  ;;  %v493_v8 = vsub.f32 %v1313_v53, %v492_v62  ;;  %v499_v12 = vsub.f32 %v1316_v54, %v498_v63  ;;  %v510_v13 = vand.u32 4294901760, %v1331_v60  ;;  %v293_v30 = vand.u32 4294901760, %v292_v58 }
  0x1e   : > { %331 = vmatpush.msra.mxu2 %v1234_v21  ;;  %365 = vmatpush.msra.mxu3 %v1218_v17  ;;  %v1365_v31 = vsub.f32 %v193_v48, %v1328_v59  ;;  %v505_v35 = vsub.f32 %v1319_v55, %v504_v0  ;;  %v1375_v14 = vand.u32 4294901760, %v1341_v1  ;;  %v299_v37 = vand.u32 4294901760, %v298_v6 }
  0x1f   : > { %276 = vmatpush.msra.mxu1 %v275_v49  ;;  %235 = vmatpush.msra.mxu0 %v1231_v20  ;;  %v494_v34 = vand.u32 4294901760, %v493_v8  ;;  %v500_v36 = vand.u32 4294901760, %v499_v12  ;;  %v511_v38 = vsub.f32 %v1331_v60, %v510_v13  ;;  %v1387_v39 = vsub.f32 %v190_v61, %v1359_v29 }
  0x20   : > { %334 = vmatpush.msra.mxu2 %v1250_v28  ;;  %367 = vmatpush.msra.mxu3 %v1231_v20  ;;  %v1389_v40 = vand.u32 4294901760, %v184_v32  ;;  %v516_v15 = vand.u32 4294901760, %v1365_v31  ;;  %v239_v41 = vsub.f32 %v1341_v1, %v1375_v14  ;;  %vm925_vm1 = vcmask 269312  }
  0x21   : > { %386 = vmatpush.msrb.mxu0 %v255_v22  ;;  %282 = vmatpush.msra.mxu1 %v281_v57  ;;  %v1377_v22 = vand.u32 4294901760, %v187_v7  ;;  %v512_v16 = vand.u32 4294901760, %v511_v38  ;;  %v191_v57 = vld [vmem:[%s1650_s1 + $0x40] sm:$0xff] }
  0x22   : > { %337 = vmatpush.msra.mxu2 %v1268_v33  ;;  %495 = vmatpush.msrb.mxu3 %v494_v34  ;;  %v1405_v44 = vsub.f32 %v184_v32, %v1389_v40  ;;  %v517_v18 = vsub.f32 %v1365_v31, %v516_v15  ;;  %v1522_v61 = vand.u32 4294901760, %v191_v57 }
  0x23   : > { %390 = vmatpush.msrb.mxu0 %v261_v23  ;;  %288 = vmatpush.msra.mxu1 %v287_v2  ;;  %v506_v23 = vand.u32 4294901760, %v505_v35  ;;  %v1398_v42 = vsub.f32 %v187_v7, %v1377_v22  ;;  %v185_v2 = vld [vmem:[%s1650_s1 + $0x10] sm:$0xff] }
  0x24   : > { %458 = vmatpush.msrb.mxu2 %v1296_v45  ;;  %501 = vmatpush.msrb.mxu3 %v500_v36  ;;  %v534_v19 = vand.u32 4294901760, %v1405_v44  ;;  %v1553_v8 = vsub.f32 %v191_v57, %v1522_v61 }
  0x25   : > { %394 = vmatpush.msrb.mxu0 %v267_v24  ;;  %294 = vmatpush.msra.mxu1 %v293_v30  ;;  %v522_v24 = vand.u32 4294901760, %v1387_v39  ;;  %v528_v48 = vand.u32 4294901760, %v1398_v42 }
  0x26   : > { %460 = vmatpush.msrb.mxu2 %v1298_v46  ;;  %507 = vmatpush.msrb.mxu3 %v506_v23  ;;  %v535_v21 = vsub.f32 %v1405_v44, %v534_v19  ;;  %v759_v34 = vand.u32 4294901760, %v1553_v8 }
  0x27   : > { %398 = vmatpush.msrb.mxu0 %v273_v25  ;;  %300 = vmatpush.msra.mxu1 %v299_v37  ;;  %v1414_v25 = vand.u32 4294901760, %v239_v41 }
  0x28   : > { %462 = vmatpush.msrb.mxu2 %v1300_v47  ;;  %513 = vmatpush.msrb.mxu3 %v512_v16  ;;  %v536_v28 = vand.u32 4294901760, %v535_v21  ;;  %v760_v38 = vsub.f32 %v1553_v8, %v759_v34 }
  0x29   : > { %429 = vmatpush.msrb.mxu1 %v1180_v3  ;;  %402 = vmatpush.msrb.mxu0 %v279_v26  ;;  %v523_v3 = vsub.f32 %v1387_v39, %v522_v24  ;;  %v518_v26 = vand.u32 4294901760, %v517_v18 }
  0x2a   : > { %464 = vmatpush.msrb.mxu2 %v1308_v51  ;;  %241 = vmatmul.f32.vlgmr.msra.gmra.mxu0 %v1414_v25  ;;  %v761_v23 = vand.u32 4294901760, %v760_v38 }
  0x2b   : > { %431 = vmatpush.msrb.mxu1 %v1182_v4  ;;  %406 = vmatpush.msrb.mxu0 %v285_v27  ;;  %v529_v4 = vsub.f32 %v1398_v42, %v528_v48  ;;  %v206_v27 = vld [vmem:[%s1650_s1 + $0xb8] sm:$0xff] }
  0x2c   : > { %340 = vmatmul.f32.vlgmr.msra.gmra.mxu2 %v1341_v1  ;;  %371 = vmatmul.f32.vlgmr.msra.gmra.mxu3 %v1375_v14  ;;  %v1455_v33 = vand.u32 4294901760, %v206_v27 }
  0x2d   : > { %433 = vmatpush.msrb.mxu1 %v1184_v5  ;;  %410 = vmatpush.msrb.mxu0 %v291_v43  ;;  %v524_v5 = vand.u32 4294901760, %v523_v3 }
  0x2e   : > { %466 = vmatpush.msrb.mxu2 %v1328_v59  ;;  %519 = vmatpush.msrb.mxu3 %v518_v26  ;;  %v1474_v49 = vsub.f32 %v206_v27, %v1455_v33 }
  0x2f   : > { %435 = vmatpush.msrb.mxu1 %v1195_v9  ;;  %414 = vmatpush.msrb.mxu0 %v297_v50  ;;  %v530_v9 = vand.u32 4294901760, %v529_v4 }
  0x30   : > { %468 = vmatpush.msrb.mxu2 %v1359_v29  ;;  %302 = vmatmul.f32.vlgmr.msra.gmra.mxu1 %v1321_v56 }
  0x31   : > { %437 = vmatpush.msrb.mxu1 %v1197_v10  ;;  %553 = vmatpush.msra.mxu0 %v1313_v53  ;;  %v203_v10 = vld [vmem:[%s1650_s1 + $0xa0] sm:$0xff]  ;;  %v194_v53 = vld [vmem:[%s1650_s1 + $0x58] sm:$0xff] }
  0x32   : > { %470 = vmatpush.msrb.mxu2 %v1377_v22  ;;  %525 = vmatpush.msrb.mxu3 %v524_v5  ;;  %v1464_v43 = vand.u32 4294901760, %v203_v10 }
  0x33   : > { %439 = vmatpush.msrb.mxu1 %v1199_v11  ;;  %556 = vmatpush.msra.mxu0 %v1316_v54  ;;  %v200_v11 = vld [vmem:[%s1650_s1 + $0x88] sm:$0xff] }
  0x34   : > { %472 = vmatpush.msrb.mxu2 %v1389_v40  ;;  %531 = vmatpush.msrb.mxu3 %v530_v9  ;;  %v1486_v52 = vsub.f32 %v203_v10, %v1464_v43 }
  0x35   : > { %441 = vmatpush.msrb.mxu1 %v1218_v17  ;;  %559 = vmatpush.msra.mxu0 %v1319_v55  ;;  %v197_v17 = vld [vmem:[%s1650_s1 + $0x70] sm:$0xff]  ;;  %v1501_v55 = vand.u32 4294901760, %v194_v53 }
  0x36   : > { %623 = vmatpush.msra.mxu2 %v492_v62  ;;  %537 = vmatpush.msrb.mxu3 %v536_v28  ;;  %v1483_v50 = vand.u32 4294901760, %v197_v17  ;;  %v188_v62 = vld [vmem:[%s1650_s1 + $0x28] sm:$0xff] }
  0x37   : > { %443 = vmatpush.msrb.mxu1 %v1231_v20  ;;  %562 = vmatpush.msra.mxu0 %v1331_v60  ;;  %v1476_v20 = vand.u32 4294901760, %v200_v11  ;;  %v1544_v6 = vand.u32 4294901760, %v188_v62 }
  0x38   : > { %627 = vmatpush.msra.mxu2 %v498_v63  ;;  %666 = vmatpush.msra.mxu3 %v1296_v45  ;;  %v1511_v58 = vsub.f32 %v197_v17, %v1483_v50  ;;  %v1530_v63 = vsub.f32 %v194_v53, %v1501_v55 }
  0x39   : > { %590 = vmatpush.msra.mxu1 %v1296_v45  ;;  %416 = vmatmul.f32.vlgmr.msrb.gmra.mxu0 %v1321_v56  ;;  %v729_v45 = vand.u32 4294901760, %v1474_v49  ;;  %v1497_v54 = vsub.f32 %v200_v11, %v1476_v20 }
  0x3a   : > { %631 = vmatpush.msra.mxu2 %v504_v0  ;;  %565 = vmatpush.msra.mxu0 %v1365_v31  ;;  %v747_v0 = vand.u32 4294901760, %v1511_v58  ;;  %v753_v12 = vand.u32 4294901760, %v1530_v63  ;;  %v1569_v31 = vsub.f32 %v188_v62, %v1544_v6 }
  0x3b   : > { %592 = vmatpush.msra.mxu1 %v1298_v46  ;;  %668 = vmatpush.msra.mxu3 %v1298_v46  ;;  %v735_v46 = vand.u32 4294901760, %v1486_v52  ;;  %v730_v60 = vsub.f32 %v1474_v49, %v729_v45 }
  0x3c   : > { %445 = vmatmul.f32.vlgmr.msrb.gmra.mxu1 %v1321_v56  ;;  %568 = vmatpush.msra.mxu0 %v1387_v39  ;;  %v748_v30 = vsub.f32 %v1511_v58, %v747_v0  ;;  %v754_v35 = vsub.f32 %v1530_v63, %v753_v12  ;;  %v765_v37 = vand.u32 4294901760, %v1569_v31 }
  0x3d   : > { %594 = vmatpush.msra.mxu1 %v1300_v47  ;;  %635 = vmatpush.msra.mxu2 %v510_v13  ;;  %v1558_v13 = vand.u32 4294901760, %v185_v2 }
  0x3e   : > { %670 = vmatpush.msra.mxu3 %v1300_v47  ;;  %571 = vmatpush.msra.mxu0 %v1398_v42  ;;  %v741_v47 = vand.u32 4294901760, %v1497_v54  ;;  %v749_v36 = vand.u32 4294901760, %v748_v30  ;;  %v755_v39 = vand.u32 4294901760, %v754_v35 }
  0x3f   : > { %596 = vmatpush.msra.mxu1 %v1308_v51  ;;  %639 = vmatpush.msra.mxu2 %v516_v15 }
  0x40   : > { %672 = vmatpush.msra.mxu3 %v1308_v51  ;;  %574 = vmatpush.msra.mxu0 %v1405_v44  ;;  %v736_v51 = vsub.f32 %v1486_v52, %v735_v46  ;;  %v742_v7 = vsub.f32 %v1497_v54, %v741_v47 }
  0x41   : > { %598 = vmatpush.msra.mxu1 %v1328_v59  ;;  %643 = vmatpush.msra.mxu2 %v522_v24 }
  0x42   : > { %674 = vmatpush.msra.mxu3 %v1328_v59  ;;  %695 = vmatpush.msrb.mxu0 %v1455_v33  ;;  %v731_v59 = vand.u32 4294901760, %v730_v60  ;;  %v743_v32 = vand.u32 4294901760, %v742_v7 }
  0x43   : > { %600 = vmatpush.msra.mxu1 %v1359_v29  ;;  %647 = vmatpush.msra.mxu2 %v528_v48 }
  0x44   : > { %676 = vmatpush.msra.mxu3 %v1359_v29  ;;  %697 = vmatpush.msrb.mxu0 %v1464_v43  ;;  %v737_v29 = vand.u32 4294901760, %v736_v51 }
  0x45   : > { %602 = vmatpush.msra.mxu1 %v1377_v22  ;;  %478 = vmatmul.f32.vlgmr.msrb.gmra.mxu2 %v1414_v25 }
  0x46   : > { %678 = vmatpush.msra.mxu3 %v1377_v22  ;;  %651 = vmatpush.msra.mxu2 %v534_v19  ;;  %v770_v22 = vsub.f32 %v185_v2, %v1558_v13 }
  0x47   : > { %604 = vmatpush.msra.mxu1 %v1389_v40  ;;  %699 = vmatpush.msrb.mxu0 %v1476_v20 }
  0x48   : > { %790 = vmatpush.msrb.mxu2 %v1474_v49  ;;  %539 = vmatmul.f32.vlgmr.msrb.gmra.mxu3 %v1321_v56  ;;  %v771_v15 = vand.u32 4294901760, %v770_v22 }
  0x49   : > { %732 = vmatpush.msrb.mxu1 %v731_v59  ;;  %701 = vmatpush.msrb.mxu0 %v1483_v50 }
  0x4a   : > { %680 = vmatpush.msra.mxu3 %v1389_v40  ;;  %793 = vmatpush.msrb.mxu2 %v1486_v52  ;;  %v766_v40 = vsub.f32 %v1569_v31, %v765_v37  ;;  %v772_v41 = vsub.f32 %v770_v22, %v771_v15 }
  0x4b   : > { %738 = vmatpush.msrb.mxu1 %v737_v29  ;;  %703 = vmatpush.msrb.mxu0 %v1501_v55 }
  0x4c   : > { %827 = vmatpush.msrb.mxu3 %v1455_v33  ;;  %796 = vmatpush.msrb.mxu2 %v1497_v54  ;;  %v767_v42 = vand.u32 4294901760, %v766_v40  ;;  %v773_v16 = vand.u32 4294901760, %v772_v41 }
  0x4d   : > { %744 = vmatpush.msrb.mxu1 %v743_v32  ;;  %705 = vmatpush.msrb.mxu0 %v1522_v61 }
  0x4e   : > { %829 = vmatpush.msrb.mxu3 %v1464_v43  ;;  %799 = vmatpush.msrb.mxu2 %v1511_v58 }
  0x4f   : > { %750 = vmatpush.msrb.mxu1 %v749_v36  ;;  %653 = vmatmul.f32.vlgmr.msra.gmra.mxu2 %v1321_v56 }
  0x50   : > { %831 = vmatpush.msrb.mxu3 %v1476_v20  ;;  %707 = vmatpush.msrb.mxu0 %v1544_v6 }
  0x51   : > { %756 = vmatpush.msrb.mxu1 %v755_v39  ;;  %802 = vmatpush.msrb.mxu2 %v1530_v63 }
  0x52   : > { %833 = vmatpush.msrb.mxu3 %v1483_v50  ;;  %577 = vmatmul.f32.vlgmr.msra.gmra.mxu0 %v1341_v1 }
  0x53   : > { %682 = vmatmul.f32.vlgmr.msra.gmra.mxu3 %v1321_v56  ;;  %709 = vmatpush.msrb.mxu0 %v1558_v13 }
  0x54   : > { %762 = vmatpush.msrb.mxu1 %v761_v23  ;;  %805 = vmatpush.msrb.mxu2 %v1553_v8 }
  0x55   : > { %835 = vmatpush.msrb.mxu3 %v1501_v55  ;;  %860 = vmatpush.msra.mxu0 %v729_v45 }
  0x56   : > { %608 = vmatmul.f32.vlgmr.msra.gmra.mxu1 %v1375_v14  ;;  %808 = vmatpush.msrb.mxu2 %v1569_v31 }
  0x57   : > { %768 = vmatpush.msrb.mxu1 %v767_v42  ;;  %837 = vmatpush.msrb.mxu3 %v1522_v61 }
  0x58   : > { %864 = vmatpush.msra.mxu0 %v735_v46  ;;  %811 = vmatpush.msrb.mxu2 %v770_v22 }
  0x59   : > { %774 = vmatpush.msrb.mxu1 %v773_v16  ;;  %839 = vmatpush.msrb.mxu3 %v1544_v6 }
  0x5a   : > { %868 = vmatpush.msra.mxu0 %v741_v47  ;;  %814 = vmatmul.f32.vlgmr.msrb.gmra.mxu2 %v1341_v1 }
  0x5b   : > { %903 = vmatpush.msra.mxu1 %v1455_v33  ;;  %841 = vmatpush.msrb.mxu3 %v1558_v13 }
  0x5c   : > { %872 = vmatpush.msra.mxu0 %v747_v0  ;;  %845 = vmatmul.f32.vlgmr.msrb.gmra.mxu3 %v1375_v14 }
  0x5d   : > { %905 = vmatpush.msra.mxu1 %v1464_v43  ;;  %715 = vmatmul.f32.vlgmr.msrb.gmra.mxu0 %v1414_v25 }
  0x5e   : > { %876 = vmatpush.msra.mxu0 %v753_v12  ;;  %776 = vmatmul.f32.vlgmr.msrb.gmra.mxu1 %v1321_v56 }
  0x5f   : > { %907 = vmatpush.msra.mxu1 %v1476_v20 }
  0x60   : > { %880 = vmatpush.msra.mxu0 %v759_v34 }
  0x61   : > { %909 = vmatpush.msra.mxu1 %v1483_v50 }
  0x62   : > { %884 = vmatpush.msra.mxu0 %v765_v37 }
  0x63   : > { %911 = vmatpush.msra.mxu1 %v1501_v55 }
  0x64   : > { %888 = vmatpush.msra.mxu0 %v771_v15 }
  0x65   : > { %913 = vmatpush.msra.mxu1 %v1522_v61  ;;  %890 = vmatmul.f32.vlgmr.msra.gmra.mxu0 %v1321_v56 }
  0x67   : > { %915 = vmatpush.msra.mxu1 %v1544_v6 }
  0x69   : > { %917 = vmatpush.msra.mxu1 %v1558_v13 }
  0x6a   : > { %919 = vmatmul.f32.vlgmr.msra.gmra.mxu1 %v1321_v56 }
  0xa7   : > { %v242_v1 = vpop.f32.mrf.mxu0 }
  0xad   : > { %v303_v14 = vpop.f32.mrf.mxu1 }
  0xae   : > { %v304_v44 = vadd.f32 %v303_v14, %v242_v1 }
  0xaf   : > { %v341_v24 = vpop.f32.mrf.mxu2  ;;  %v372_v25 = vpop.f32.mrf.mxu3 }
  0xb0   : > { %v342_v18 = vadd.f32 %v341_v24, %v304_v44 }
  0xb2   : > { %v373_v48 = vadd.f32 %v372_v25, %v342_v18 }
  0xb6   : > { %v417_v3 = vpop.f32.mrf.mxu0 }
  0xb7   : > { %v418_v19 = vadd.f32 %v417_v3, %v373_v48 }
  0xb9   : > { %v446_v56 = vpop.f32.mrf.mxu1 }
  0xba   : > { %v447_v26 = vadd.f32 %v446_v56, %v418_v19 }
  0xbc   : > { %923 = vst [vmem:[%s181_s11] sm:$0xff] %v447_v26 }
  0xc8   : > { %v479_v4 = vpop.f32.mrf.mxu2 }
  0xcb   : > { %v540_v5 = vpop.f32.mrf.mxu3 }
  0xcc   : > { %v541_v21 = vadd.f32 %v540_v5, %v479_v4 }
  0xcf   : > { %v578_v9 = vpop.f32.mrf.mxu0 }
  0xd0   : > { %v579_v27 = vadd.f32 %v578_v9, %v541_v21 }
  0xd2   : > { %v654_v10 = vpop.f32.mrf.mxu2 }
  0xd3   : > { %v609_v28 = vpop.f32.mrf.mxu1 }
  0xd4   : > { %v610_v33 = vadd.f32 %v609_v28, %v579_v27 }
  0xd6   : > { %v655_v11 = vadd.f32 %v654_v10, %v610_v33  ;;  %v683_v43 = vpop.f32.mrf.mxu3 }
  0xd8   : > { %v684_v17 = vadd.f32 %v683_v43, %v655_v11 }
  0xda   : > { %924 = vst [vmem:[%s181_s11 + $0x8] sm:$0xff] %v684_v17  ;;  %v716_v49 = vpop.f32.mrf.mxu0 }
  0xdb   : > { %v777_v20 = vpop.f32.mrf.mxu1 }
  0xdc   : > { %v778_v50 = vadd.f32 %v777_v20, %v716_v49 }
  0xdd   : > { %v815_v52 = vpop.f32.mrf.mxu2 }
  0xde   : > { %v816_v53 = vadd.f32 %v815_v52, %v778_v50 }
  0xdf   : > { %v846_v45 = vpop.f32.mrf.mxu3 }
  0xe0   : > { %v847_v54 = vadd.f32 %v846_v45, %v816_v53 }
  0xe2   : > { %v891_v55 = vpop.f32.mrf.mxu0 }
  0xe3   : > { %v892_v57 = vadd.f32 %v891_v55, %v847_v54 }
  0xe7   : > { %v920_v46 = vpop.f32.mrf.mxu1 }
  0xe8   : > { %v921_v58 = vadd.f32 %v920_v46, %v892_v57 }
  0xea   : > { %926 = vst.msk [vmem:[%s181_s11 + $0x10] sm:$0xff] %vm925_vm1, %v921_v58 }
  0xeb PF: > { %s13_s16 = sadd.s32 1, %s1113_s16   ;;  %s1653_s12 = smov %s1105_s14 }
  0xec   : > { %p10_p8 = scmp.ge.s32.totalorder %s13_s16, 6   ;;  %s1654_s13 = smov %s1109_s15 }
  0xed   : > { %s1655_s14 = smov %s1658_s2  ;;  %s1656_s15 = smov %s1662_s17 }
  0xee   :  { %12 = sbr.rel (!%p10_p8) target bundleno = 3 (0x3), region = 58 }

</bundles_post_ra>
